<compile_context>
chip_gen: v5e
topology: v5e:2x2
jax: 0.10.0
libtpu: 0.0.40
codegen_flags: <defaults>
</compile_context>

<pallas_src>
import functools

import jax
import jax.numpy as jnp
from jax.experimental import pallas as pl
from jax.experimental.pallas import tpu as pltpu

_LANE = 128


def _round_up(x, m):
    return ((x + m - 1) // m) * m


def _cdiv(a, b):
    return (a + b - 1) // b


def _sublane_align(itemsize):
    # native sublane tile: 8 rows (4-byte), 16 (2-byte), 32 (1-byte) dtypes
    if itemsize >= 4:
        return 8
    if itemsize == 2:
        return 16
    return 32


def _vmem_budget():
    """Generation-aware working-set budget + explicit scoped-VMEM limit."""
    phys = 64 * 1024 * 1024            # conservative fallback (v7x-sized VMEM)
    try:
        phys = int(pltpu.get_tpu_info().vmem_capacity_bytes)
    except Exception:
        pass
    # ~1/3 of physical VMEM for the double-buffered working set:
    #   v5e/v6e (128 MiB) -> ~42 MiB, v7x (64 MiB) -> ~21 MiB.
    budget = max(8 * 1024 * 1024, min(phys // 3, 48 * 1024 * 1024))
    limit = int(min(phys - (4 * 1024 * 1024), budget + (16 * 1024 * 1024)))
    limit = max(limit, budget)
    return budget, limit


def _pick_rows(nrows, per_row_bytes, align, budget):
    """Largest sublane-aligned row tile whose (double-buffer-counted,
    lane-padded) footprint fits `budget`.  Capped at ceil(nrows/2) rows so the
    'parallel' grid axis has >= 2 steps (v7x megacore) whenever possible."""
    tb = budget // max(per_row_bytes, 1)
    tb = max(align, (tb // align) * align)
    if nrows >= 2 * align:
        tb = min(tb, _round_up(_cdiv(nrows, 2), align))
    tb = min(tb, _round_up(nrows, align))
    return max(align, tb)


# --------------------------------------------------------------------------
# Kernels
# --------------------------------------------------------------------------
def _bce_sum_kernel(x_ref, t_ref, out_ref, *, valid_rows, need_mask):
    """Lane-dense BCE-with-logits partial sum: one (1,1,1) partial per tile."""
    x = x_ref[...].astype(jnp.float32)
    t = t_ref[...].astype(jnp.float32)
    # Numerically-stable BCEWithLogits: max(x,0) - x*t + log1p(exp(-|x|))
    bce = jnp.maximum(x, 0.0) - x * t + jnp.log1p(jnp.exp(-jnp.abs(x)))
    if need_mask:
        sb = x_ref.shape[0]
        rows = (jax.lax.broadcasted_iota(jnp.int32, (sb, 1), 0)
                + pl.program_id(0) * sb)
        bce = jnp.where(rows < valid_rows, bce, 0.0)
    s = jnp.sum(jnp.sum(bce, axis=1, keepdims=True), axis=0, keepdims=True)
    out_ref[...] = s.reshape(1, 1, 1)


def _ce_rows(yp_ref, yt_ref, *, batch, need_mask):
    """Per-row cross-entropy (stable log-softmax) for the current tile."""
    logits = yp_ref[...].astype(jnp.float32)
    m = jnp.max(logits, axis=1, keepdims=True)
    z = logits - m
    lse = jnp.log(jnp.sum(jnp.exp(z), axis=1, keepdims=True))
    yt = yt_ref[...]                                            # (tb, 1) int32
    col = jax.lax.broadcasted_iota(jnp.int32, logits.shape, 1)
    onehot = (col == yt).astype(jnp.float32)
    ce = jnp.sum(onehot * (lse - z), axis=1, keepdims=True)     # (tb, 1)
    if need_mask:
        tb = logits.shape[0]
        rows = (jax.lax.broadcasted_iota(jnp.int32, (tb, 1), 0)
                + pl.program_id(0) * tb)
        ce = jnp.where(rows < batch, ce, jnp.zeros_like(ce))
    return ce


def _ce_sum_kernel(yp_ref, yt_ref, out_ref, *, batch, need_mask):
    """Cross-entropy partial sum: one (1,1,1) partial per batch tile."""
    ce = _ce_rows(yp_ref, yt_ref, batch=batch, need_mask=need_mask)
    out_ref[...] = jnp.sum(ce, axis=0, keepdims=True).reshape(1, 1, 1)


def _cbm_persample_kernel(cp_ref, ct_ref, yp_ref, yt_ref, out_ref, *,
                          alpha, batch, need_mask):
    """Per-sample losses; writes one combined (tb, 3) block:
    [concepts_i, class_i, final_i]."""
    x = cp_ref[...].astype(jnp.float32)
    t = ct_ref[...].astype(jnp.float32)
    bce = jnp.maximum(x, 0.0) - x * t + jnp.log1p(jnp.exp(-jnp.abs(x)))
    concepts_i = jnp.mean(bce, axis=1, keepdims=True)           # (tb, 1)
    class_i = _ce_rows(yp_ref, yt_ref, batch=batch, need_mask=False)
    if need_mask:
        tb = concepts_i.shape[0]
        rows = (jax.lax.broadcasted_iota(jnp.int32, (tb, 1), 0)
                + pl.program_id(0) * tb)
        valid = rows < batch
        zero = jnp.zeros_like(concepts_i)
        concepts_i = jnp.where(valid, concepts_i, zero)
        class_i = jnp.where(valid, class_i, zero)
    final_i = class_i + alpha * concepts_i
    colsel = jax.lax.broadcasted_iota(jnp.int32, (concepts_i.shape[0], 3), 1)
    out_ref[...] = jnp.where(colsel == 0, concepts_i,
                             jnp.where(colsel == 1, class_i, final_i))


# --------------------------------------------------------------------------
# Wrapper
# --------------------------------------------------------------------------
def binary_cbm_loss(concept_preds, concepts_true, y_pred, y_true, *,
                    alpha, return_all=False, reduce_loss=True,
                    block_rows=None, validate=False):
    """JAX/Pallas equivalent of BinaryCBMLoss.forward.

    validate=True reproduces the eager 0/1 concept-label check of the torch
    module (device->host sync; not usable under jax.jit).
    """
    if concept_preds.shape != concepts_true.shape:
        raise ValueError(
            "The concepts labels and concepts logits are expected to be of "
            f"matching shapes\nFound logits: {concept_preds.shape}, "
            f"labels: {concepts_true.shape}")
    if validate:
        if not bool(jnp.all(jnp.logical_or(concepts_true == 1,
                                           concepts_true == 0))):
            raise ValueError("the concept label should contain the values 1 or 0.")

    B, C = concept_preds.shape
    K = y_pred.shape[1]
    yt2d = y_true.reshape(B, 1).astype(jnp.int32)
    alpha = float(alpha)

    cp_item = jnp.dtype(concept_preds.dtype).itemsize
    ct_item = jnp.dtype(concepts_true.dtype).itemsize
    yp_item = jnp.dtype(y_pred.dtype).itemsize

    budget, vmem_limit = _vmem_budget()
    cparams = pltpu.CompilerParams(dimension_semantics=("parallel",),
                                   vmem_limit_bytes=vmem_limit)

    if reduce_loss:
        # ---------------- lane-dense BCE sum over all B*C elements ---------
        N = B * C
        M = _cdiv(N, _LANE)
        pad = M * _LANE - N
        cpf = concept_preds.reshape(-1)
        ctf = concepts_true.reshape(-1)
        if pad:
            # Sentinel padding contributes *exactly* zero to the BCE sum:
            # max(-1e4,0) - (-1e4)*0 + log1p(exp(-1e4)) == 0 in f32.
            cpf = jnp.pad(cpf, (0, pad), constant_values=-1e4)
            ctf = jnp.pad(ctf, (0, pad), constant_values=0)
        cpd = cpf.reshape(M, _LANE)
        ctd = ctf.reshape(M, _LANE)

        align_b = max(_sublane_align(cp_item), _sublane_align(ct_item))
        per_row_b = 2 * _LANE * (cp_item + ct_item)     # 2 pipeline buffers
        if block_rows is None:
            sb = _pick_rows(M, per_row_b, align_b, budget)
        else:
            sb = max(align_b, _round_up(int(block_rows), align_b))
            sb = min(sb, _round_up(M, align_b))
        nb_b = _cdiv(M, sb)
        bce_cost = pl.CostEstimate(
            flops=6 * N, transcendentals=2 * N,
            bytes_accessed=N * (cp_item + ct_item) + nb_b * 4)
        bce_kernel = functools.partial(_bce_sum_kernel, valid_rows=M,
                                       need_mask=(M % sb != 0))
        bce_partials = pl.pallas_call(
            bce_kernel,
            out_shape=jax.ShapeDtypeStruct((nb_b, 1, 1), jnp.float32),
            grid=(nb_b,),
            in_specs=[pl.BlockSpec((sb, _LANE), lambda i: (i, 0)),
                      pl.BlockSpec((sb, _LANE), lambda i: (i, 0))],
            out_specs=pl.BlockSpec((1, 1, 1), lambda i: (i, 0, 0)),
            compiler_params=cparams,
            cost_estimate=bce_cost,
        )(cpd, ctd)
        concepts_loss = jnp.sum(bce_partials) / (B * C)   # mean over B*C elems

        # ---------------- cross-entropy sum over the batch ------------------
        align_c = _sublane_align(yp_item)
        per_row_c = 2 * (_round_up(K, _LANE) * yp_item + _LANE * 4)
        if block_rows is None:
            tb = _pick_rows(B, per_row_c, align_c, budget)
        else:
            tb = max(align_c, _round_up(int(block_rows), align_c))
            tb = min(tb, _round_up(B, align_c))
        nb_c = _cdiv(B, tb)
        ce_cost = pl.CostEstimate(
            flops=6 * B * K, transcendentals=B * (K + 1),
            bytes_accessed=B * K * yp_item + B * 4 + nb_c * 4)
        ce_kernel = functools.partial(_ce_sum_kernel, batch=B,
                                      need_mask=(B % tb != 0))
        ce_partials = pl.pallas_call(
            ce_kernel,
            out_shape=jax.ShapeDtypeStruct((nb_c, 1, 1), jnp.float32),
            grid=(nb_c,),
            in_specs=[pl.BlockSpec((tb, K), lambda i: (i, 0)),
                      pl.BlockSpec((tb, 1), lambda i: (i, 0))],
            out_specs=pl.BlockSpec((1, 1, 1), lambda i: (i, 0, 0)),
            compiler_params=cparams,
            cost_estimate=ce_cost,
        )(y_pred, yt2d)
        class_loss = jnp.sum(ce_partials) / B

        final_loss = class_loss + alpha * concepts_loss
        assert final_loss.ndim == 0, (
            "The final loss should be a scalar when reduce_loss = True. "
            f"Found: {final_loss.shape}")
    else:
        # ---------------- per-sample path -----------------------------------
        align = max(_sublane_align(cp_item), _sublane_align(ct_item),
                    _sublane_align(yp_item))
        per_row = 2 * (_round_up(C, _LANE) * (cp_item + ct_item)
                       + _round_up(K, _LANE) * yp_item
                       + _LANE * 4          # (tb,1) int32 labels, lane-padded
                       + _LANE * 4)         # (tb,3) f32 output, lane-padded
        if block_rows is None:
            tb = _pick_rows(B, per_row, align, budget)
        else:
            tb = max(align, _round_up(int(block_rows), align))
            tb = min(tb, _round_up(B, align))
        nb = _cdiv(B, tb)
        ps_cost = pl.CostEstimate(
            flops=6 * B * C + 6 * B * K,
            transcendentals=2 * B * C + B * (K + 1),
            bytes_accessed=(B * (C * (cp_item + ct_item) + K * yp_item)
                            + B * 4 + B * 3 * 4))
        kernel = functools.partial(_cbm_persample_kernel, alpha=alpha,
                                   batch=B, need_mask=(B % tb != 0))
        out = pl.pallas_call(
            kernel,
            out_shape=jax.ShapeDtypeStruct((B, 3), jnp.float32),
            grid=(nb,),
            in_specs=[pl.BlockSpec((tb, C), lambda i: (i, 0)),
                      pl.BlockSpec((tb, C), lambda i: (i, 0)),
                      pl.BlockSpec((tb, K), lambda i: (i, 0)),
                      pl.BlockSpec((tb, 1), lambda i: (i, 0))],
            out_specs=pl.BlockSpec((tb, 3), lambda i: (i, 0)),
            compiler_params=cparams,
            cost_estimate=ps_cost,
        )(concept_preds, concepts_true, y_pred, yt2d)
        concepts_loss = out[:, 0]
        class_loss = out[:, 1]
        final_loss = out[:, 2]
        assert final_loss.shape == (B,), (
            "The final loss should be a vector when reduce_loss = False. "
            f"Found: {final_loss.shape}")

    if return_all:
        return concepts_loss, class_loss, final_loss
    return final_loss


# --------------------------------------------------------------------------
# Pure-JAX reference + self-test
# --------------------------------------------------------------------------
def _reference(concept_preds, concepts_true, y_pred, y_true, alpha):
    x = concept_preds.astype(jnp.float32)
    t = concepts_true.astype(jnp.float32)
    bce = jnp.maximum(x, 0.0) - x * t + jnp.log1p(jnp.exp(-jnp.abs(x)))
    concepts_per = jnp.mean(bce, axis=1)                          # (B,)
    logp = jax.nn.log_softmax(y_pred.astype(jnp.float32), axis=-1)
    class_per = -jnp.take_along_axis(logp, y_true.reshape(-1, 1), axis=1)[:, 0]
    final_per = class_per + alpha * concepts_per
    return concepts_per, class_per, final_per


if __name__ == "__main__":
    key = jax.random.PRNGKey(0)
    k1, k2, k3, k4, k5, k6, k7, k8 = jax.random.split(key, 8)
    alpha = 0.5

    # --- config 1: B*C not a multiple of 128 (sentinel-padded dense path) ---
    B, C, K = 13, 12, 6
    concept_preds = jax.random.normal(k1, (B, C), dtype=jnp.float32)
    concepts_true = jax.random.bernoulli(k2, 0.5, (B, C)).astype(jnp.float32)
    y_pred = jax.random.normal(k3, (B, K), dtype=jnp.float32)
    y_true = jax.random.randint(k4, (B,), 0, K, dtype=jnp.int32)

    c_ref, k_ref, f_ref = _reference(concept_preds, concepts_true, y_pred,
                                     y_true, alpha)
    ref_scalar = jnp.mean(f_ref)

    loss = binary_cbm_loss(concept_preds, concepts_true, y_pred, y_true,
                           alpha=alpha)
    loss = jax.block_until_ready(loss)
    assert jnp.allclose(loss, ref_scalar, atol=1e-5, rtol=1e-5), (loss, ref_scalar)

    # forced small tiles -> multiple grid steps + padded-row masking
    loss_tiled = binary_cbm_loss(concept_preds, concepts_true, y_pred, y_true,
                                 alpha=alpha, block_rows=8)
    loss_tiled = jax.block_until_ready(loss_tiled)
    assert jnp.allclose(loss_tiled, ref_scalar, atol=1e-5, rtol=1e-5)

    # works under jit (host-syncing validation is gated off by default)
    jit_loss = jax.jit(functools.partial(binary_cbm_loss, alpha=alpha))
    loss_jit = jax.block_until_ready(
        jit_loss(concept_preds, concepts_true, y_pred, y_true))
    assert jnp.allclose(loss_jit, ref_scalar, atol=1e-5, rtol=1e-5)

    # per-sample / return_all path (combined (B,3) output)
    c_l, cl_l, f_l = binary_cbm_loss(concept_preds, concepts_true, y_pred,
                                     y_true, alpha=alpha, return_all=True,
                                     reduce_loss=False, block_rows=8)
    f_l = jax.block_until_ready(f_l)
    assert f_l.shape == (B,)
    assert jnp.allclose(c_l, c_ref, atol=1e-5, rtol=1e-5)
    assert jnp.allclose(cl_l, k_ref, atol=1e-5, rtol=1e-5)
    assert jnp.allclose(f_l, f_ref, atol=1e-5, rtol=1e-5)

    # --- config 2: B*C % 128 == 0 (free lane-dense reshape, no pad copy) ----
    B2, C2, K2 = 32, 16, 10
    cp2 = jax.random.normal(k5, (B2, C2), dtype=jnp.float32)
    ct2 = jax.random.bernoulli(k6, 0.5, (B2, C2)).astype(jnp.float32)
    yp2 = jax.random.normal(k7, (B2, K2), dtype=jnp.float32)
    yt2 = jax.random.randint(k8, (B2,), 0, K2, dtype=jnp.int32)
    c2_ref, k2_ref, f2_ref = _reference(cp2, ct2, yp2, yt2, alpha)

    loss2 = jax.block_until_ready(
        binary_cbm_loss(cp2, ct2, yp2, yt2, alpha=alpha))
    assert jnp.allclose(loss2, jnp.mean(f2_ref), atol=1e-5, rtol=1e-5)

    c2, cl2, f2 = binary_cbm_loss(cp2, ct2, yp2, yt2, alpha=alpha,
                                  return_all=True, reduce_loss=False)
    f2 = jax.block_until_ready(f2)
    assert jnp.allclose(c2, c2_ref, atol=1e-5, rtol=1e-5)
    assert jnp.allclose(cl2, k2_ref, atol=1e-5, rtol=1e-5)
    assert jnp.allclose(f2, f2_ref, atol=1e-5, rtol=1e-5)

    print("KERNEL_OK")
</pallas_src>

<mosaic_0001>
module attributes {stable_mosaic.version = 11 : i64} {
  func.func @_bce_sum_kernel(%arg0: i32, %arg1: memref<8x128xf32, #tpu.memory_space<vmem>>, %arg2: memref<8x128xf32, #tpu.memory_space<vmem>>, %arg3: memref<1x1x1xf32, #tpu.memory_space<vmem>>) attributes {dimension_semantics = [#tpu.dimension_semantics<parallel>], iteration_bounds = array<i64: 1>, scalar_prefetch = 0 : i64, scratch_operands = 0 : i64, tpu.core_type = #tpu.core_type<tc>, window_params = [{transform_indices = @transform_0, window_bounds = array<i64: 8, 128>}, {transform_indices = @transform_1, window_bounds = array<i64: 8, 128>}, {transform_indices = @transform_2, window_bounds = array<i64: 1, 1, 1>}]} {
    %c0 = arith.constant 0 : index
    %c0_0 = arith.constant 0 : index
    %0 = vector.load %arg1[%c0, %c0_0] : memref<8x128xf32, #tpu.memory_space<vmem>>, vector<8x128xf32>
    %c0_1 = arith.constant 0 : index
    %c0_2 = arith.constant 0 : index
    %1 = vector.load %arg2[%c0_1, %c0_2] : memref<8x128xf32, #tpu.memory_space<vmem>>, vector<8x128xf32>
    %cst = arith.constant 0.000000e+00 : f32
    %2 = vector.broadcast %cst : f32 to vector<8x128xf32>
    %3 = arith.maximumf %0, %2 : vector<8x128xf32>
    %4 = arith.mulf %0, %1 : vector<8x128xf32>
    %5 = arith.subf %3, %4 : vector<8x128xf32>
    %6 = math.absf %0 : vector<8x128xf32>
    %cst_3 = arith.constant 0.000000e+00 : f32
    %7 = vector.broadcast %cst_3 : f32 to vector<8x128xf32>
    %8 = arith.subf %7, %6 : vector<8x128xf32>
    %9 = math.exp %8 : vector<8x128xf32>
    %10 = math.log1p %9 : vector<8x128xf32>
    %11 = arith.addf %5, %10 : vector<8x128xf32>
    %12 = tpu.iota {dimensions = array<i32: 0>} : vector<8x1xi32>
    %c8_i32 = arith.constant 8 : i32
    %13 = arith.muli %arg0, %c8_i32 : i32
    %14 = vector.broadcast %13 : i32 to vector<8x1xi32>
    %15 = arith.addi %12, %14 : vector<8x1xi32>
    %c2_i32 = arith.constant 2 : i32
    %16 = vector.broadcast %c2_i32 : i32 to vector<8x1xi32>
    %17 = arith.cmpi slt, %15, %16 : vector<8x1xi32>
    %cst_4 = arith.constant 0.000000e+00 : f32
    %18 = vector.shape_cast %17 : vector<8x1xi1> to vector<8x1xi1>
    %19 = vector.broadcast %18 : vector<8x1xi1> to vector<8x128xi1>
    %20 = vector.broadcast %cst_4 : f32 to vector<8x128xf32>
    %21 = arith.select %19, %11, %20 : vector<8x128xi1>, vector<8x128xf32>
    %cst_5 = arith.constant dense<0.000000e+00> : vector<8xf32>
    %22 = vector.multi_reduction <add>, %21, %cst_5 [1] : vector<8x128xf32> to vector<8xf32>
    %23 = vector.shape_cast %22 : vector<8xf32> to vector<8x1xf32>
    %cst_6 = arith.constant dense<0.000000e+00> : vector<1xf32>
    %24 = vector.multi_reduction <add>, %23, %cst_6 [0] : vector<8x1xf32> to vector<1xf32>
    %25 = vector.shape_cast %24 : vector<1xf32> to vector<1x1xf32>
    %26 = vector.shape_cast %25 : vector<1x1xf32> to vector<1x1x1xf32>
    %c0_7 = arith.constant 0 : index
    %c0_8 = arith.constant 0 : index
    %c0_9 = arith.constant 0 : index
    %27 = vector.load %arg3[%c0_7, %c0_8, %c0_9] : memref<1x1x1xf32, #tpu.memory_space<vmem>>, vector<1x1x1xf32>
    tpu.vector_store %arg3[%c0_7, %c0_8, %c0_9], %26 {strides = array<i32>} : memref<1x1x1xf32, #tpu.memory_space<vmem>>, vector<1x1x1xf32>,
    return
  }
  func.func @transform_0(%arg0: i32) -> (i32, i32) {
    %c0_i32 = arith.constant 0 : i32
    %c0_i32_0 = arith.constant 0 : i32
    return %arg0, %c0_i32 : i32, i32
  }
  func.func @transform_1(%arg0: i32) -> (i32, i32) {
    %c0_i32 = arith.constant 0 : i32
    %c0_i32_0 = arith.constant 0 : i32
    return %arg0, %c0_i32 : i32, i32
  }
  func.func @transform_2(%arg0: i32) -> (i32, i32, i32) {
    %c0_i32 = arith.constant 0 : i32
    %c0_i32_0 = arith.constant 0 : i32
    %c0_i32_1 = arith.constant 0 : i32
    return %arg0, %c0_i32, %c0_i32_0 : i32, i32, i32
  }
}

</mosaic_0001>

<bundles_post_ra>
// kernel: tpu_custom_call.1
= control target key start
LH: loop header
LB: loop body
LE: loop exit
PB: predicated region body
PF: predicated region fallthrough
CT: control target
= control target key end

     0   :  { %7 = vsyncpa [#allocation3], 0  ;;  %s216_s0 = inlined_call_operand.hbm [shape: f32[2,128], index: 0, kind: input, shape index: {}]   ;;  %s217_s1 = inlined_call_operand.hbm [shape: f32[2,128], index: 1, kind: input, shape index: {}]   ;;  %s218_s2 = inlined_call_operand.hbm [shape: f32[1,1,1], index: 2, kind: output, shape index: {}]  }
   0x1   :  { %8 = vsyncpa [#allocation6], 0 }
   0x2   :  { %9 = vsyncpa [#allocation4], 0 }
   0x3   :  { %13 = vsyncadd [#allocation3], 96  ;;  %s14_s11 = sshll.u32 %s216_s0, 4  ;;  %s187_s12 = smov [#allocation2]   ;;  %s15_s11 = int_to_ptr.hbm [resolvable:$true] %s14_s11 }
   0x4   :  { %s16_s13 = sshll.u32 %s187_s12, 4  ;;  %s188_s14 = smov 32   ;;  %s17_s13 = int_to_ptr.vmem [resolvable:$true] %s16_s13 }
   0x5   :  { %s189_s15 = smov 2  }
   0x6   :  { %22 = dma.hbm_to_vmem [thread:$0]  %s15_s11, 32, %s17_s13, [#allocation3], %s188_s14, %s188_s14, %s189_s15  }
   0x7   :  { %26 = vsyncadd [#allocation6], 96  ;;  %s27_s18 = sshll.u32 %s217_s1, 4  ;;  %s190_s19 = smov [#allocation5]   ;;  %s28_s18 = int_to_ptr.hbm [resolvable:$true] %s27_s18 }
   0x8   :  { %s29_s20 = sshll.u32 %s190_s19, 4  ;;  %s30_s20 = int_to_ptr.vmem [resolvable:$true] %s29_s20 }
   0x9   :  { %35 = dma.hbm_to_vmem [thread:$0]  %s28_s18, 32, %s30_s20, [#allocation6], %s188_s14, %s188_s14, %s189_s15  }
   0xa   :  { %181 = dma.done.wait [#allocation3], 128  }
   0xb   :  { %182 = vsyncadd [#allocation3], 4294967168 }
   0xc   :  { %183 = dma.done.wait [#allocation6], 128  }
   0xd   :  { %184 = vsyncadd [#allocation6], 4294967168  ;;  %v44_v0 = vld [vmem:[#allocation2] sm:$0xff]  ;;  %v45_v7 = vld [vmem:[#allocation5] sm:$0xff]  ;;  %v63_v9 = vlaneseq  ;;  %s191_s0 = smov [#allocation7]   ;;  %s89_s23 = sshll.u32 %s218_s2, 4  ;;  %s90_s23 = int_to_ptr.hbm [resolvable:$true] %s89_s23 }
   0xe   :  { %v49_v1 = vand.u32 2147483647, %v44_v0  ;;  %v46_v10 = vmax.f32 %v44_v0, 0.0  ;;  %v47_v11 = vmul.f32 %v45_v7, %v44_v0  ;;  %s87_s1 = sshll.u32 %s191_s0, 4  ;;  %vm80_vm2 = vcmask 0   ;;  %s88_s1 = int_to_ptr.vmem [resolvable:$true] %s87_s1 }
   0xf   :  { %v64_v14 = vshrl.u32 %v63_v9, 7 }
  0x10   :  { %v50_v2 = vsub.f32 0.0, %v49_v1  ;;  %v48_v16 = vsub.f32 %v46_v10, %v47_v11 }
  0x11   :  { %vm68_vm1 = vcmp.lt.s32.totalorder %v64_v14, 2 }
  0x12   :  { %v51_v3 = vmul.f32 1.442695, %v50_v2 }
  0x14   :  { %105 = vpow2.f32 %v51_v3 }
  0x1a   :  { %v106_v4 = vpop.eup %105 }
  0x1b   :  { %v53_v5 = vadd.f32 1.0, %v106_v4  ;;  %v56_v6 = vmul.f32 -0.5, %v106_v4  ;;  %v59_v12 = vand.u32 2147483647, %v106_v4 }
  0x1d   :  { %107 = vlog2.f32 %v53_v5  ;;  %v57_v8 = vadd.f32 1.0, %v56_v6  ;;  %vm60_vm0 = vcmp.lt.f32.partialorder %v59_v12, 0.0004427343 }
  0x1f   :  { %v58_v13 = vmul.f32 %v106_v4, %v57_v8 }
  0x23   :  { %v108_v15 = vpop.eup %107 }
  0x24   :  { %v55_v17 = vmul.f32 0.6931472, %v108_v15 }
  0x26   :  { %v61_v18 = vsel %vm60_vm0, %v58_v13, %v55_v17 }
  0x27   :  { %v62_v19 = vadd.f32 %v61_v18, %v48_v16 }
  0x29   :  { %v71_v20 = vsel %vm68_vm1, %v62_v19, 0.0 }
  0x2a   :  { %72 = vadd.xlane.f32.xlu0 %v71_v20 }
  0x9d   :  { %v73_v21 = vpop.xlane.xlu0 %72 }
  0x9e   :  { %v74_v22 = vrot.slane %v73_v21, 4 }
  0xa0   :  { %v75_v23 = vadd.f32 %v74_v22, %v73_v21 }
  0xa2   :  { %v76_v24 = vrot.slane %v75_v23, 2 }
  0xa4   :  { %v77_v25 = vadd.f32 %v76_v24, %v75_v23 }
  0xa6   :  { %v78_v26 = vrot.slane %v77_v25, 1 }
  0xa8   :  { %v79_v27 = vadd.f32 %v78_v26, %v77_v25 }
  0xaa   :  { %81 = vst.msk [vmem:[#allocation7] sm:$0x1] %vm80_vm2, %v79_v27 }
  0xab   :  { %92 = dma.vmem_to_hbm [thread:$0]  %s88_s1, 16, %s90_s23, [#allocation4]  }
  0xac   :  { %185 = dma.done.wait [#allocation4], 16  }
  0xad   :  { %186 = vsyncadd [#allocation4], 4294967280 }
  0xae   :  { %97 = vsyncpa [#allocation3], 1 }
  0xaf   :  { %98 = vsyncpa [#allocation6], 1 }
  0xb0   :  { %99 = vsyncpa [#allocation4], 1 }

</bundles_post_ra>
